<compile_context>
chip_gen: v6e
topology: v6e:2x2x1
jax: 0.10.0
libtpu: 0.0.40
codegen_flags: <defaults>
</compile_context>

<pallas_src>
import functools

import jax
import jax.numpy as jnp
from jax.experimental import pallas as pl
from jax.experimental.pallas import tpu as pltpu


def _focal_modulation(q, gamma):
    """(1 - p)^gamma on the (TILE_N, 1) column only."""
    g = float(gamma)
    if g == int(g) and 0 <= int(g) <= 4:
        gi = int(g)
        if gi == 0:
            return jnp.ones_like(q)
        out = q
        for _ in range(gi - 1):
            out = out * q
        return out
    # Non-integer gamma: pow on the narrow (TILE_N, 1) column, q already >= 0.
    return jnp.power(q, jnp.float32(g))


def focal_loss_kernel(x_ref, t_ref, a_ref, o_ref, *, gamma, n_total, tile_n):
    i = pl.program_id(0)

    x = x_ref[...].astype(jnp.float32)        # (TILE_N, C) logits (f32 compute)
    t = t_ref[...]                            # (TILE_N, 1) int32 targets
    alpha = a_ref[...].astype(jnp.float32)    # (1, C) per-class alpha

    tn, c = x.shape

    # Log-domain softmax gather (no full-row normalization).
    m = jnp.max(x, axis=1, keepdims=True)                   # (TILE_N, 1)
    s = jnp.sum(jnp.exp(x - m), axis=1, keepdims=True)      # (TILE_N, 1)

    # One-hot class mask: lane-only iota broadcast vs (TILE_N, 1) targets.
    ids = jax.lax.broadcasted_iota(jnp.int32, (1, c), 1)    # (1, C)
    mask = ids == t                                         # (TILE_N, C) bool

    x_t = jnp.sum(jnp.where(mask, x, 0.0), axis=1, keepdims=True)      # logit[target]
    alpha_s = jnp.sum(jnp.where(mask, alpha, 0.0), axis=1, keepdims=True)  # alpha[target]

    log_p = (x_t - m) - jnp.log(s)                          # (TILE_N, 1), <= 0
    probs = jnp.exp(log_p)

    q = jnp.maximum(1.0 - probs, 0.0)                       # clamp f32 rounding
    per_row = -alpha_s * _focal_modulation(q, gamma) * log_p  # (TILE_N, 1)

    # Ragged final tile: zero out rows past the true batch size (keeps any
    # garbage/NaN in the padded rows from leaking into the reduction).
    row_ids = i * tile_n + jax.lax.broadcasted_iota(jnp.int32, (tn, 1), 0)
    o_ref[...] = jnp.where(row_ids < n_total, per_row, 0.0)


def focal_loss(inputs, targets, alpha, *, gamma=2.0, size_average=True,
               rows_override=None):
    """inputs: (N, C) float logits; targets: (N,) int; alpha: (C,) float.

    rows_override: optional tile-row cap, used only to exercise the
    tiled/ragged path at small test sizes.
    """
    inputs = jnp.asarray(inputs)
    if not jnp.issubdtype(inputs.dtype, jnp.floating):
        inputs = inputs.astype(jnp.float32)
    n, c = inputs.shape
    itemsize = inputs.dtype.itemsize

    t2d = jnp.asarray(targets).reshape(n, 1).astype(jnp.int32)
    a2d = jnp.asarray(alpha).reshape(1, c).astype(jnp.float32)

    # --- per-chip tile sizing -------------------------------------------------
    try:
        vmem_cap = int(pltpu.get_tpu_info().vmem_capacity_bytes)
    except Exception:  # fallback (e.g. interpret mode)
        vmem_cap = 128 << 20

    # ~1/16 of VMEM worth of f32-equivalent logits per block, clamped to
    # [512 KiB, 8 MiB]  (-> 8 MiB on v5e/v6e, 4 MiB on v7x).
    tile_f32_bytes = max(512 << 10, min(8 << 20, vmem_cap // 16))
    rows_cap = max(32, tile_f32_bytes // (4 * c))
    # Sublane packing of the native dtype: 8 for f32, 16 for bf16, 32 for 8-bit.
    pack = max(8, 32 // max(1, itemsize))
    rows_cap = max(pack, (rows_cap // pack) * pack)
    if rows_override is not None:
        rows_cap = max(pack, (int(rows_override) // pack) * pack)
    tile_n = n if n <= rows_cap else rows_cap
    num_tiles = pl.cdiv(n, tile_n)

    # Explicit VMEM budget: double-buffered native-dtype logits + a few
    # full-tile f32 temporaries inside the kernel + small columns.
    need = (2 * tile_n * c * itemsize       # logits double buffer
            + 6 * tile_n * c * 4            # in-kernel f32 temporaries (conservative)
            + 4 * tile_n * 16               # targets / per-row columns (dbl-buffered)
            + 2 * c * 4)                    # alpha
    vmem_limit = int(min(vmem_cap * 3 // 4, max(32 << 20, need * 3 // 2)))

    kernel = functools.partial(
        focal_loss_kernel,
        gamma=float(gamma),
        n_total=n,
        tile_n=tile_n,
    )

    cost = pl.CostEstimate(
        flops=8 * n * c,
        transcendentals=n * c + 3 * n,
        bytes_accessed=itemsize * n * c + 4 * n + 4 * c + 4 * num_tiles * tile_n,
    )

    out = pl.pallas_call(
        kernel,
        out_shape=jax.ShapeDtypeStruct((num_tiles * tile_n, 1), jnp.float32),
        grid=(num_tiles,),
        in_specs=[
            pl.BlockSpec((tile_n, c), lambda i: (i, 0)),   # logits tile (native dtype)
            pl.BlockSpec((tile_n, 1), lambda i: (i, 0)),   # targets tile
            pl.BlockSpec((1, c), lambda i: (0, 0)),        # alpha (resident)
        ],
        out_specs=pl.BlockSpec((tile_n, 1), lambda i: (i, 0)),  # per-row losses
        compiler_params=pltpu.CompilerParams(
            dimension_semantics=("parallel",),             # independent tiles (2 TCs on v7x)
            vmem_limit_bytes=vmem_limit,
        ),
        cost_estimate=cost,
    )(inputs, t2d, a2d)

    total = jnp.sum(out[:, 0])
    if size_average:
        return total / jnp.float32(n)
    return total


def focal_loss_ref(inputs, targets, alpha, *, gamma=2.0, size_average=True):
    p = jax.nn.softmax(inputs.astype(jnp.float32), axis=1)
    probs = jnp.take_along_axis(p, targets[:, None], axis=1)[:, 0]
    a = alpha[targets].astype(jnp.float32)
    batch_loss = -a * jnp.power(1.0 - probs, gamma) * jnp.log(probs)
    return jnp.mean(batch_loss) if size_average else jnp.sum(batch_loss)


if __name__ == "__main__":
    key = jax.random.PRNGKey(0)

    # --- small shape matching the module's defaults (alpha=None -> ones) ---
    k1, k2 = jax.random.split(key)
    N, C = 8, 32
    inputs = jax.random.normal(k1, (N, C), dtype=jnp.float32)
    targets = jax.random.randint(k2, (N,), 0, C, dtype=jnp.int32)
    alpha = jnp.ones((C,), dtype=jnp.float32)

    loss = focal_loss(inputs, targets, alpha, gamma=2.0, size_average=True)
    jax.block_until_ready(loss)
    ref = focal_loss_ref(inputs, targets, alpha, gamma=2.0, size_average=True)
    assert jnp.allclose(loss, ref, rtol=1e-5, atol=1e-5), (loss, ref)

    # --- bf16 inputs streamed in their native dtype (no wrapper up-cast) ---
    k3, k4, k5 = jax.random.split(jax.random.PRNGKey(1), 3)
    Nb, Cb = 64, 128
    inputs_bf = jax.random.normal(k3, (Nb, Cb), dtype=jnp.float32).astype(jnp.bfloat16)
    targets_b = jax.random.randint(k4, (Nb,), 0, Cb, dtype=jnp.int32)
    alpha_b = jax.random.uniform(k5, (Cb,), dtype=jnp.float32, minval=0.1,
                                 maxval=1.0)
    loss_b = focal_loss(inputs_bf, targets_b, alpha_b, gamma=2.0,
                        size_average=True)
    jax.block_until_ready(loss_b)
    ref_b = focal_loss_ref(inputs_bf, targets_b, alpha_b, gamma=2.0,
                           size_average=True)
    assert jnp.allclose(loss_b, ref_b, rtol=1e-4, atol=1e-5), (loss_b, ref_b)

    # --- non-divisible batch exercising the multi-tile / ragged path -------
    k6, k7, k8 = jax.random.split(jax.random.PRNGKey(2), 3)
    N2, C2 = 1000, 128
    inputs2 = jax.random.normal(k6, (N2, C2), dtype=jnp.float32)
    targets2 = jax.random.randint(k7, (N2,), 0, C2, dtype=jnp.int32)
    alpha2 = jax.random.uniform(k8, (C2,), dtype=jnp.float32, minval=0.1,
                                maxval=1.0)

    loss2 = focal_loss(inputs2, targets2, alpha2, gamma=2.0, size_average=True,
                       rows_override=256)   # force 4 tiles + ragged last tile
    jax.block_until_ready(loss2)
    ref2 = focal_loss_ref(inputs2, targets2, alpha2, gamma=2.0,
                          size_average=True)
    assert jnp.allclose(loss2, ref2, rtol=1e-5, atol=1e-5), (loss2, ref2)

    # sum reduction path (size_average=False)
    loss3 = focal_loss(inputs2, targets2, alpha2, gamma=2.0,
                       size_average=False, rows_override=256)
    jax.block_until_ready(loss3)
    ref3 = focal_loss_ref(inputs2, targets2, alpha2, gamma=2.0,
                          size_average=False)
    assert jnp.allclose(loss3, ref3, rtol=1e-4, atol=1e-4), (loss3, ref3)

    print("KERNEL_OK")
</pallas_src>

<mosaic_0001>
module attributes {stable_mosaic.version = 11 : i64} {
  func.func @focal_loss_kernel(%arg0: i32, %arg1: memref<8x32xf32, #tpu.memory_space<vmem>>, %arg2: memref<8x1xi32, #tpu.memory_space<vmem>>, %arg3: memref<1x32xf32, #tpu.memory_space<vmem>>, %arg4: memref<8x1xf32, #tpu.memory_space<vmem>>) attributes {dimension_semantics = [#tpu.dimension_semantics<parallel>], iteration_bounds = array<i64: 1>, scalar_prefetch = 0 : i64, scratch_operands = 0 : i64, tpu.core_type = #tpu.core_type<tc>, window_params = [{transform_indices = @transform_0, window_bounds = array<i64: 8, 32>}, {transform_indices = @transform_1, window_bounds = array<i64: 8, 1>}, {pipeline_mode = #tpu.pipeline_mode<synchronous>, transform_indices = @transform_2, window_bounds = array<i64: 1, 32>}, {transform_indices = @transform_3, window_bounds = array<i64: 8, 1>}]} {
    %c0 = arith.constant 0 : index
    %c0_0 = arith.constant 0 : index
    %0 = vector.load %arg1[%c0, %c0_0] : memref<8x32xf32, #tpu.memory_space<vmem>>, vector<8x32xf32>
    %c0_1 = arith.constant 0 : index
    %c0_2 = arith.constant 0 : index
    %1 = vector.load %arg2[%c0_1, %c0_2] : memref<8x1xi32, #tpu.memory_space<vmem>>, vector<8x1xi32>
    %c0_3 = arith.constant 0 : index
    %c0_4 = arith.constant 0 : index
    %2 = vector.load %arg3[%c0_3, %c0_4] : memref<1x32xf32, #tpu.memory_space<vmem>>, vector<1x32xf32>
    %cst = arith.constant dense<0xFF800000> : vector<8xf32>
    %3 = vector.multi_reduction <maximumf>, %0, %cst [1] : vector<8x32xf32> to vector<8xf32>
    %4 = vector.shape_cast %3 : vector<8xf32> to vector<8x1xf32>
    %5 = vector.broadcast %4 : vector<8x1xf32> to vector<8x32xf32>
    %6 = arith.subf %0, %5 : vector<8x32xf32>
    %7 = math.exp %6 : vector<8x32xf32>
    %cst_5 = arith.constant dense<0.000000e+00> : vector<8xf32>
    %8 = vector.multi_reduction <add>, %7, %cst_5 [1] : vector<8x32xf32> to vector<8xf32>
    %9 = vector.shape_cast %8 : vector<8xf32> to vector<8x1xf32>
    %10 = tpu.iota {dimensions = array<i32: 1>} : vector<1x32xi32>
    %11 = vector.broadcast %10 : vector<1x32xi32> to vector<8x32xi32>
    %12 = vector.broadcast %1 : vector<8x1xi32> to vector<8x32xi32>
    %13 = arith.cmpi eq, %11, %12 : vector<8x32xi32>
    %cst_6 = arith.constant 0.000000e+00 : f32
    %14 = vector.broadcast %cst_6 : f32 to vector<8x32xf32>
    %15 = arith.select %13, %0, %14 : vector<8x32xi1>, vector<8x32xf32>
    %cst_7 = arith.constant dense<0.000000e+00> : vector<8xf32>
    %16 = vector.multi_reduction <add>, %15, %cst_7 [1] : vector<8x32xf32> to vector<8xf32>
    %17 = vector.shape_cast %16 : vector<8xf32> to vector<8x1xf32>
    %cst_8 = arith.constant 0.000000e+00 : f32
    %18 = vector.shape_cast %2 : vector<1x32xf32> to vector<1x32xf32>
    %19 = vector.broadcast %18 : vector<1x32xf32> to vector<8x32xf32>
    %20 = vector.broadcast %cst_8 : f32 to vector<8x32xf32>
    %21 = arith.select %13, %19, %20 : vector<8x32xi1>, vector<8x32xf32>
    %cst_9 = arith.constant dense<0.000000e+00> : vector<8xf32>
    %22 = vector.multi_reduction <add>, %21, %cst_9 [1] : vector<8x32xf32> to vector<8xf32>
    %23 = vector.shape_cast %22 : vector<8xf32> to vector<8x1xf32>
    %24 = arith.subf %17, %4 : vector<8x1xf32>
    %25 = math.log %9 : vector<8x1xf32>
    %26 = arith.subf %24, %25 : vector<8x1xf32>
    %27 = math.exp %26 : vector<8x1xf32>
    %cst_10 = arith.constant 1.000000e+00 : f32
    %28 = vector.broadcast %cst_10 : f32 to vector<8x1xf32>
    %29 = arith.subf %28, %27 : vector<8x1xf32>
    %cst_11 = arith.constant 0.000000e+00 : f32
    %30 = vector.broadcast %cst_11 : f32 to vector<8x1xf32>
    %31 = arith.maximumf %29, %30 : vector<8x1xf32>
    %cst_12 = arith.constant 0.000000e+00 : f32
    %32 = vector.broadcast %cst_12 : f32 to vector<8x1xf32>
    %33 = arith.subf %32, %23 : vector<8x1xf32>
    %34 = arith.mulf %31, %31 : vector<8x1xf32>
    %35 = arith.mulf %33, %34 : vector<8x1xf32>
    %36 = arith.mulf %35, %26 : vector<8x1xf32>
    %c8_i32 = arith.constant 8 : i32
    %37 = arith.muli %arg0, %c8_i32 : i32
    %38 = tpu.iota {dimensions = array<i32: 0>} : vector<8x1xi32>
    %39 = vector.broadcast %37 : i32 to vector<8x1xi32>
    %40 = arith.addi %39, %38 : vector<8x1xi32>
    %c8_i32_13 = arith.constant 8 : i32
    %41 = vector.broadcast %c8_i32_13 : i32 to vector<8x1xi32>
    %42 = arith.cmpi slt, %40, %41 : vector<8x1xi32>
    %cst_14 = arith.constant 0.000000e+00 : f32
    %43 = vector.broadcast %cst_14 : f32 to vector<8x1xf32>
    %44 = arith.select %42, %36, %43 : vector<8x1xi1>, vector<8x1xf32>
    %c0_15 = arith.constant 0 : index
    %c0_16 = arith.constant 0 : index
    %45 = vector.load %arg4[%c0_15, %c0_16] : memref<8x1xf32, #tpu.memory_space<vmem>>, vector<8x1xf32>
    tpu.vector_store %arg4[%c0_15, %c0_16], %44 {strides = array<i32>} : memref<8x1xf32, #tpu.memory_space<vmem>>, vector<8x1xf32>,
    return
  }
  func.func @transform_0(%arg0: i32) -> (i32, i32) {
    %c0_i32 = arith.constant 0 : i32
    %c0_i32_0 = arith.constant 0 : i32
    return %arg0, %c0_i32 : i32, i32
  }
  func.func @transform_1(%arg0: i32) -> (i32, i32) {
    %c0_i32 = arith.constant 0 : i32
    %c0_i32_0 = arith.constant 0 : i32
    return %arg0, %c0_i32 : i32, i32
  }
  func.func @transform_2(%arg0: i32) -> (i32, i32) {
    %c0_i32 = arith.constant 0 : i32
    %c0_i32_0 = arith.constant 0 : i32
    %c0_i32_1 = arith.constant 0 : i32
    return %c0_i32, %c0_i32_0 : i32, i32
  }
  func.func @transform_3(%arg0: i32) -> (i32, i32) {
    %c0_i32 = arith.constant 0 : i32
    %c0_i32_0 = arith.constant 0 : i32
    return %arg0, %c0_i32 : i32, i32
  }
}

</mosaic_0001>

<bundles_post_ra>
// kernel: tpu_custom_call.1
= control target key start
LH: loop header
LB: loop body
LE: loop exit
PB: predicated region body
PF: predicated region fallthrough
CT: control target
= control target key end

     0   :  { %vm17_vm0 = vcmask 261120   ;;  %v81_v1 = vmov 0   ;;  %v27_v7 = vlaneseq  ;;  %vm66_vm2 = vcmask 7168   ;;  %s118_s0 = inlined_call_operand.vmem [shape: f32[8,32], index: 0, kind: input, shape index: {}]   ;;  %s119_s1 = inlined_call_operand.vmem [shape: s32[8,1], index: 1, kind: input, shape index: {}]   ;;  %s120_s2 = inlined_call_operand.vmem [shape: f32[1,32], index: 2, kind: input, shape index: {}]   ;;  %s121_s3 = inlined_call_operand.vmem [shape: f32[8,1], index: 3, kind: output, shape index: {}]  }
   0x1   :  { %v14_v0 = vld [vmem:[%s118_s0] sm:$0xff]  ;;  %74 = vset.pattern.permute.xlu0 %v81_v1 }
   0x2   :  { %v18_v2 = vsel %vm17_vm0, %v14_v0, -inf  ;;  %v15_v3 = vld [vmem:[%s119_s1] sm:$0xff]  ;;  %v28_v8 = vand.u32 127, %v27_v7 }
   0x3   :  { %19 = vmax.xlane.f32.xlu0 %v18_v2  ;;  %v72_v13 = vld [vmem:[%s120_s2] ss:$0 sm:$0xff] }
  0x19   :  { %30 = vperm.xlu0 %74, %v15_v3  }
  0x8c   :  { %v20_v4 = vpop.xlane.xlu0 %19 }
  0x8d   :  { %v21_v5 = vsub.f32 %v14_v0, %v20_v4 }
  0x8f   :  { %v22_v6 = vmul.f32 1.442695, %v21_v5 }
  0x91   :  { %75 = vpow2.f32 %v22_v6 }
  0x94   :  { %v31_v9 = vpop.permute.xlu0 %30 }
  0x95   :  { %vm32_vm1 = vcmp.eq.s32.totalorder %v28_v8, %v31_v9 }
  0x96   :  { %v33_v11 = vsel %vm32_vm1, %v14_v0, 0.0  ;;  %v43_v15 = vsel %vm32_vm1, %v72_v13, 0.0 }
  0x97   :  { %v34_v14 = vsel %vm17_vm0, %v33_v11, 0.0  ;;  %v44_v16 = vsel %vm17_vm0, %v43_v15, 0.0 }
  0x9e   :  { %v76_v10 = vpop.eup %75 }
  0x9f   :  { %v24_v12 = vsel %vm17_vm0, %v76_v10, 0.0 }
  0xa0   :  { %25 = vadd.xlane.f32.xlu1 %v24_v12 }
  0xa4   :  { %35 = vadd.xlane.f32.xlu1 %v34_v14 }
  0xa8   :  { %45 = vadd.xlane.f32.xlu1 %v44_v16 }
 0x129   :  { %v26_v17 = vpop.xlane.xlu1 %25 }
 0x12a   :  { %77 = vlog2.f32 %v26_v17 }
 0x12d   :  { %v36_v18 = vpop.xlane.xlu1 %35 }
 0x12e   :  { %v47_v21 = vsub.f32 %v36_v18, %v20_v4 }
 0x131   :  { %v46_v26 = vpop.xlane.xlu1 %45 }
 0x132   :  { %v55_v29 = vsub.f32 0.0, %v46_v26 }
 0x137   :  { %v78_v19 = vpop.eup %77 }
 0x138   :  { %v49_v20 = vmul.f32 0.6931472, %v78_v19 }
 0x13a   :  { %v50_v22 = vsub.f32 %v47_v21, %v49_v20 }
 0x13c   :  { %v51_v23 = vmul.f32 1.442695, %v50_v22 }
 0x13e   :  { %79 = vpow2.f32 %v51_v23 }
 0x14b   :  { %v80_v24 = vpop.eup %79 }
 0x14c   :  { %v53_v25 = vsub.f32 1.0, %v80_v24 }
 0x14e   :  { %v54_v27 = vmax.f32 %v53_v25, 0.0 }
 0x150   :  { %v56_v28 = vmul.f32 %v54_v27, %v54_v27 }
 0x152   :  { %v57_v30 = vmul.f32 %v56_v28, %v55_v29 }
 0x154   :  { %v58_v31 = vmul.f32 %v57_v30, %v50_v22 }
 0x156   :  { %67 = vst.msk [vmem:[%s121_s3] sm:$0xff] %vm66_vm2, %v58_v31 }

</bundles_post_ra>
